<compile_context>
chip_gen: v7x
topology: tpu7x:2x2x1
jax: 0.10.0
libtpu: 0.0.40
codegen_flags: <defaults>
</compile_context>

<pallas_src>
import functools

import jax
import jax.numpy as jnp
from jax import lax
from jax.experimental import pallas as pl
from jax.experimental.pallas import tpu as pltpu

LANES = 128
TILE_BYTES = 4 * 1024 * 1024        # bytes per input block (per pipeline buffer)
ACC_ROWS_MAX = 32                   # rows of the resident per-core accumulator
VMEM_LIMIT_BYTES = 32 * 1024 * 1024


def _num_tensorcores():
    """2 TensorCores per chip on v7x-class devices, 1 on v5e/v6e."""
    # TODO(synk): confirm in xprof that the leading "parallel" axis really lands
    # on both TCs on v7x; if not, switch that axis to pltpu.CORE_PARALLEL.
    try:
        kind = jax.devices()[0].device_kind.lower()
    except Exception:
        return 1
    return 2 if "v7" in kind else 1


def _charbonnier_kernel(x1_ref, x2_ref, out_ref, *, eps2, tile_rows, acc_rows,
                        blocks_per_core, last_block, valid_rows_last, guard_oob):
    p = pl.program_id(0)            # megacore axis ("parallel")
    k = pl.program_id(1)            # reduction axis ("arbitrary")
    block_idx = p * blocks_per_core + k

    # The output block's index_map depends only on p, so it stays resident in
    # VMEM across the whole inner axis and doubles as the accumulator.
    @pl.when(k == 0)
    def _():
        out_ref[...] = jnp.zeros_like(out_ref)

    def compute():
        d = x1_ref[...].astype(jnp.float32) - x2_ref[...].astype(jnp.float32)
        return jnp.sqrt(d * d + eps2)

    def accumulate(v):
        # Tree-sum over the major axis into acc_rows//8 independent vreg chains;
        # pure VPU adds, no cross-lane XLU work on the per-step path.
        out_ref[...] += jnp.sum(
            v.reshape(tile_rows // acc_rows, acc_rows, LANES), axis=0)

    mask_last = valid_rows_last != tile_rows

    if not mask_last and not guard_oob:
        # Common case: every block is full and in range -> zero masking overhead.
        accumulate(compute())
    else:
        # Interior (full, in-range) blocks: no masking work at all.
        full_cond = block_idx < last_block if mask_last else block_idx <= last_block

        @pl.when(full_cond)
        def _():
            accumulate(compute())

        if mask_last:
            # Only the last logical block can be partial.  The kernel input is
            # always an exact multiple of LANES elements, so a row-granular mask
            # with block-local indices suffices (no int32 overflow for huge n).
            @pl.when(block_idx == last_block)
            def _():
                v = compute()
                row = lax.broadcasted_iota(jnp.int32, (tile_rows, LANES), 0)
                accumulate(jnp.where(row < valid_rows_last, v, 0.0))
        # Blocks with block_idx > last_block (clamped duplicates from an odd
        # block count split across 2 cores) do nothing.


def charbonnier_loss(x1, x2, epsilon=0.001):
    """Pallas TPU Charbonnier loss: mean(sqrt((x1 - x2)^2 + eps^2)). f32 scalar."""
    assert x1.shape == x2.shape, "x1 and x2 must have the same shape"
    eps2 = float(epsilon) * float(epsilon)
    n = x1.size

    x1f = x1.reshape(-1)
    x2f = x2.reshape(-1)

    # <=127-element lane tail handled with O(128) plain-JAX work instead of a
    # full-array pad (which would cost an extra full HBM read+write pass).
    rem = n % LANES
    n_main = n - rem
    if rem:
        t1 = x1f[n_main:].astype(jnp.float32)
        t2 = x2f[n_main:].astype(jnp.float32)
        tail_sum = jnp.sum(jnp.sqrt((t1 - t2) ** 2 + eps2))
        # TODO(synk): XLA may still materialize these prefix slices; a 1-D
        # BlockSpec over the unsliced array would avoid even that copy.
        x1f = x1f[:n_main]
        x2f = x2f[:n_main]
    else:
        tail_sum = jnp.float32(0.0)

    if n_main == 0:
        return tail_sum / jnp.float32(n)

    rows = n_main // LANES

    # Size the tile by bytes so every dtype gets equal-sized (4 MiB) DMA blocks.
    itemsize = jnp.dtype(x1.dtype).itemsize
    sublane_mult = 8 * max(1, 4 // itemsize)       # 8 f32, 16 bf16, 32 int8
    max_tile_rows = max(sublane_mult, TILE_BYTES // (LANES * itemsize))
    tile_rows = min(max_tile_rows,
                    ((rows + sublane_mult - 1) // sublane_mult) * sublane_mult)

    acc_rows = ACC_ROWS_MAX
    while tile_rows % acc_rows:
        acc_rows //= 2

    x1m = x1f.reshape(rows, LANES)
    x2m = x2f.reshape(rows, LANES)

    total_blocks = pl.cdiv(rows, tile_rows)
    num_cores = _num_tensorcores() if total_blocks >= 2 else 1
    blocks_per_core = pl.cdiv(total_blocks, num_cores)
    last_block = total_blocks - 1
    valid_rows_last = rows - last_block * tile_rows
    guard_oob = num_cores * blocks_per_core > total_blocks

    if guard_oob:
        def in_index_map(p, k):
            # Clamp so every DMA stays in bounds; duplicate work is skipped
            # inside the kernel.
            return (jnp.minimum(p * blocks_per_core + k, last_block), 0)
    else:
        def in_index_map(p, k):
            return (p * blocks_per_core + k, 0)

    kernel = functools.partial(
        _charbonnier_kernel, eps2=eps2, tile_rows=tile_rows, acc_rows=acc_rows,
        blocks_per_core=blocks_per_core, last_block=last_block,
        valid_rows_last=valid_rows_last, guard_oob=guard_oob)

    partials = pl.pallas_call(
        kernel,
        out_shape=jax.ShapeDtypeStruct((num_cores * acc_rows, LANES), jnp.float32),
        grid_spec=pltpu.PrefetchScalarGridSpec(
            num_scalar_prefetch=0,
            grid=(num_cores, blocks_per_core),
            in_specs=[
                pl.BlockSpec((tile_rows, LANES), in_index_map),
                pl.BlockSpec((tile_rows, LANES), in_index_map),
            ],
            out_specs=pl.BlockSpec((acc_rows, LANES), lambda p, k: (p, 0)),
        ),
        compiler_params=pltpu.CompilerParams(
            dimension_semantics=("parallel", "arbitrary"),
            vmem_limit_bytes=VMEM_LIMIT_BYTES,
        ),
    )(x1m, x2m)

    # Tiny final reduce of the per-core (acc_rows, 128) partial sums in plain XLA.
    return (jnp.sum(partials) + tail_sum) / jnp.float32(n)


if __name__ == "__main__":
    key = jax.random.PRNGKey(0)
    k1, k2 = jax.random.split(key)
    shape = (2, 4, 16, 16)  # NCHW, typical image-restoration loss inputs
    x1 = jax.random.normal(k1, shape, dtype=jnp.float32)
    x2 = jax.random.normal(k2, shape, dtype=jnp.float32)

    loss = jax.block_until_ready(charbonnier_loss(x1, x2, epsilon=0.001))

    # Reference check in plain JAX (same math as the PyTorch module).
    ref = jnp.mean(jnp.sqrt((x1 - x2) ** 2 + 0.001 * 0.001))
    assert jnp.allclose(loss, ref, rtol=1e-5, atol=1e-6), (loss, ref)

    print("KERNEL_OK")
</pallas_src>

<mosaic_0001>
module attributes {stable_mosaic.version = 11 : i64} {
  func.func @_charbonnier_kernel(%arg0: i32, %arg1: i32, %arg2: memref<16x128xf32, #tpu.memory_space<vmem>>, %arg3: memref<16x128xf32, #tpu.memory_space<vmem>>, %arg4: memref<16x128xf32, #tpu.memory_space<vmem>>) attributes {dimension_semantics = [#tpu.dimension_semantics<parallel>, #tpu.dimension_semantics<arbitrary>], iteration_bounds = array<i64: 1, 1>, scalar_prefetch = 0 : i64, scratch_operands = 0 : i64, tpu.core_type = #tpu.core_type<tc>, window_params = [{transform_indices = @transform_0, window_bounds = array<i64: 16, 128>}, {transform_indices = @transform_1, window_bounds = array<i64: 16, 128>}, {transform_indices = @transform_2, window_bounds = array<i64: 16, 128>}]} {
    %c0_i32 = arith.constant 0 : i32
    %0 = arith.cmpi eq, %arg1, %c0_i32 : i32
    %1 = arith.extui %0 : i1 to i32
    %c0_i32_0 = arith.constant 0 : i32
    %2 = arith.cmpi ne, %1, %c0_i32_0 : i32
    scf.if %2 {
      %cst_9 = arith.constant 0.000000e+00 : f32
      %15 = vector.broadcast %cst_9 : f32 to vector<16x128xf32>
      %c0_10 = arith.constant 0 : index
      %c0_11 = arith.constant 0 : index
      %16 = vector.load %arg4[%c0_10, %c0_11] : memref<16x128xf32, #tpu.memory_space<vmem>>, vector<16x128xf32>
      tpu.vector_store %arg4[%c0_10, %c0_11], %15 {strides = array<i32>} : memref<16x128xf32, #tpu.memory_space<vmem>>, vector<16x128xf32>,
    } else {
    }
    %c0 = arith.constant 0 : index
    %c0_1 = arith.constant 0 : index
    %3 = vector.load %arg2[%c0, %c0_1] : memref<16x128xf32, #tpu.memory_space<vmem>>, vector<16x128xf32>
    %c0_2 = arith.constant 0 : index
    %c0_3 = arith.constant 0 : index
    %4 = vector.load %arg3[%c0_2, %c0_3] : memref<16x128xf32, #tpu.memory_space<vmem>>, vector<16x128xf32>
    %5 = arith.subf %3, %4 : vector<16x128xf32>
    %6 = arith.mulf %5, %5 : vector<16x128xf32>
    %cst = arith.constant 9.99999997E-7 : f32
    %7 = vector.broadcast %cst : f32 to vector<16x128xf32>
    %8 = arith.addf %6, %7 : vector<16x128xf32>
    %9 = math.sqrt %8 : vector<16x128xf32>
    %c0_4 = arith.constant 0 : index
    %c0_5 = arith.constant 0 : index
    %10 = vector.load %arg4[%c0_4, %c0_5] : memref<16x128xf32, #tpu.memory_space<vmem>>, vector<16x128xf32>
    %11 = vector.shape_cast %9 : vector<16x128xf32> to vector<1x16x128xf32>
    %cst_6 = arith.constant dense<0.000000e+00> : vector<16x128xf32>
    %12 = vector.multi_reduction <add>, %11, %cst_6 [0] : vector<1x16x128xf32> to vector<16x128xf32>
    %13 = arith.addf %10, %12 : vector<16x128xf32>
    %c0_7 = arith.constant 0 : index
    %c0_8 = arith.constant 0 : index
    %14 = vector.load %arg4[%c0_7, %c0_8] : memref<16x128xf32, #tpu.memory_space<vmem>>, vector<16x128xf32>
    tpu.vector_store %arg4[%c0_7, %c0_8], %13 {strides = array<i32>} : memref<16x128xf32, #tpu.memory_space<vmem>>, vector<16x128xf32>,
    return
  }
  func.func @transform_0(%arg0: i32, %arg1: i32) -> (i32, i32) {
    %c1_i32 = arith.constant 1 : i32
    %0 = arith.muli %arg0, %c1_i32 : i32
    %1 = arith.addi %0, %arg1 : i32
    %c0_i32 = arith.constant 0 : i32
    %c0_i32_0 = arith.constant 0 : i32
    return %1, %c0_i32 : i32, i32
  }
  func.func @transform_1(%arg0: i32, %arg1: i32) -> (i32, i32) {
    %c1_i32 = arith.constant 1 : i32
    %0 = arith.muli %arg0, %c1_i32 : i32
    %1 = arith.addi %0, %arg1 : i32
    %c0_i32 = arith.constant 0 : i32
    %c0_i32_0 = arith.constant 0 : i32
    return %1, %c0_i32 : i32, i32
  }
  func.func @transform_2(%arg0: i32, %arg1: i32) -> (i32, i32) {
    %c0_i32 = arith.constant 0 : i32
    %c0_i32_0 = arith.constant 0 : i32
    return %arg0, %c0_i32 : i32, i32
  }
}

</mosaic_0001>

<bundles_post_ra>
// kernel: tpu_custom_call.1
= control target key start
LH: loop header
LB: loop body
LE: loop exit
PB: predicated region body
PF: predicated region fallthrough
CT: control target
= control target key end

     0   :  { %7 = vsyncpa [#allocation3], 0  ;;  %s255_s0 = inlined_call_operand.hbm [shape: f32[16,128], index: 0, kind: input, shape index: {}]   ;;  %s256_s1 = inlined_call_operand.hbm [shape: f32[16,128], index: 1, kind: input, shape index: {}]   ;;  %s257_s2 = inlined_call_operand.hbm [shape: f32[16,128], index: 2, kind: output, shape index: {}]  }
   0x1   :  { %8 = vsyncpa [#allocation6], 0 }
   0x2   :  { %9 = vsyncpa [#allocation4], 0  ;;  %s190_s9 = smov [#allocation2]   ;;  %s118_s13 = scalar_lea.hbm %s255_s0, 256 }
   0x3   :  { %s19_s10 = sshll.u32 %s190_s9, 4  ;;  %p119_p0 = scmp.ne.s32.totalorder %s255_s0, %s118_s13  ;;  %s20_s10 = int_to_ptr.vmem [resolvable:$true] %s19_s10 }
   0x4   :  { %p122_p1 = scmp.lt.u32.totalorder %s118_s13, %s255_s0 }
   0x6   :  { %p124_p2 = pnand %p122_p1, %p119_p0 }
   0x8   :  { %127 = shalt.err (!%p124_p2)
}
   0x9   :  { %s128_s18 = scalar_lea.vmem %s20_s10, 256  ;;  %p133_p4 = scmp.lt.s32.totalorder %s20_s10, %s20_s10 }
   0xa   :  { %p129_p3 = scmp.ne.s32.totalorder %s20_s10, %s128_s18  ;;  %p134_p5 = scmp.lt.s32.totalorder %s128_s18, %s128_s18 }
   0xc   :  { %p135_p6 = por %p134_p5, %p133_p4 }
   0xe   :  { %p136_p7 = pnand %p135_p6, %p129_p3 }
  0x10   :  { %139 = shalt.err (!%p136_p7)
}
  0x11   :  { %s191_s19 = smov 128   ;;  %s192_s20 = smov 8  }
  0x12   :  { %25 = dma.hbm_to_vmem [thread:$0]  %s255_s0, 256, %s20_s10, [#allocation3], %s191_s19, %s191_s19, %s192_s20  }
  0x13   :  { %s193_s23 = smov [#allocation5]   ;;  %s140_s27 = scalar_lea.hbm %s256_s1, 256 }
  0x14   :  { %s35_s24 = sshll.u32 %s193_s23, 4  ;;  %p141_p8 = scmp.ne.s32.totalorder %s256_s1, %s140_s27  ;;  %s36_s24 = int_to_ptr.vmem [resolvable:$true] %s35_s24 }
  0x15   :  { %p144_p9 = scmp.lt.u32.totalorder %s140_s27, %s256_s1 }
  0x17   :  { %p146_p10 = pnand %p144_p9, %p141_p8 }
  0x19   :  { %149 = shalt.err (!%p146_p10)
}
  0x1a   :  { %s150_s4 = scalar_lea.vmem %s36_s24, 256  ;;  %p155_p12 = scmp.lt.s32.totalorder %s36_s24, %s36_s24 }
  0x1b   :  { %p151_p11 = scmp.ne.s32.totalorder %s36_s24, %s150_s4  ;;  %p156_p13 = scmp.lt.s32.totalorder %s150_s4, %s150_s4 }
  0x1d   :  { %p157_p0 = por %p156_p13, %p155_p12 }
  0x1f   :  { %p158_p1 = pnand %p157_p0, %p151_p11 }
  0x21   :  { %161 = shalt.err (!%p158_p1)
}
  0x22   :  { %41 = dma.hbm_to_vmem [thread:$0]  %s256_s1, 256, %s36_s24, [#allocation6], %s191_s19, %s191_s19, %s192_s20  }
  0x23   :  { %184 = dma.done.wait [#allocation3], 256  }
  0x24   :  { %185 = vsyncadd [#allocation3], 4294967040 }
  0x25   :  { %186 = dma.done.wait [#allocation6], 256  }
  0x26   :  { %187 = vsyncadd [#allocation6], 4294967040  ;;  %v58_v0 = vld [vmem:[#allocation2] sm:$0xff]  ;;  %v60_v1 = vld [vmem:[#allocation5] sm:$0xff]  ;;  %s194_s1 = smov [#allocation7]  }
  0x27   :  { %v59_v2 = vld [vmem:[#allocation2 + $0x8] sm:$0xff]  ;;  %v62_v3 = vsub.f32 %v58_v0, %v60_v1  ;;  %v61_v4 = vld [vmem:[#allocation5 + $0x8] sm:$0xff]  ;;  %s95_s6 = sshll.u32 %s194_s1, 4  ;;  %s96_s6 = int_to_ptr.vmem [resolvable:$true] %s95_s6 }
  0x28   :  { %v63_v5 = vsub.f32 %v59_v2, %v61_v4  ;;  %s162_s7 = scalar_lea.vmem %s96_s6, 256  ;;  %p167_p3 = scmp.lt.s32.totalorder %s96_s6, %s96_s6 }
  0x29   :  { %v64_v6 = vmul.f32 %v62_v3, %v62_v3  ;;  %p163_p2 = scmp.ne.s32.totalorder %s96_s6, %s162_s7  ;;  %p168_p4 = scmp.lt.s32.totalorder %s162_s7, %s162_s7 }
  0x2a   :  { %v65_v7 = vmul.f32 %v63_v5, %v63_v5 }
  0x2b   :  { %v66_v8 = vadd.f32 1e-06, %v64_v6  ;;  %p169_p5 = por %p168_p4, %p167_p3 }
  0x2c   :  { %v67_v9 = vadd.f32 1e-06, %v65_v7 }
  0x2d   :  { %114 = vrsqrt.f32 %v66_v8  ;;  %vm70_vm0 = vcmp.eq.f32.partialorder %v66_v8, inf  ;;  %v73_v11 = vand.u32 2147483648, %v66_v8  ;;  %vm72_vm1 = vcmp.eq.f32.partialorder %v66_v8, 0.0  ;;  %p170_p6 = pnand %p169_p5, %p163_p2 }
  0x2e   :  { %116 = vrsqrt.f32 %v67_v9  ;;  %vm77_vm2 = vcmp.eq.f32.partialorder %v67_v9, inf  ;;  %v80_v14 = vand.u32 2147483648, %v67_v9  ;;  %vm79_vm3 = vcmp.eq.f32.partialorder %v67_v9, 0.0 }
  0x37   :  { %v115_v10 = vpop.eup %114 }
  0x38   :  { %v117_v12 = vpop.eup %116  ;;  %v69_v13 = vmul.f32 %v115_v10, %v66_v8 }
  0x39   :  { %v76_v15 = vmul.f32 %v117_v12, %v67_v9 }
  0x3a   :  { %v71_v16 = vsel %vm70_vm0, %v66_v8, %v69_v13 }
  0x3b   :  { %v74_v17 = vsel %vm72_vm1, %v73_v11, %v71_v16  ;;  %v78_v18 = vsel %vm77_vm2, %v67_v9, %v76_v15 }
  0x3c   :  { %v81_v19 = vsel %vm79_vm3, %v80_v14, %v78_v18  ;;  %88 = vst [vmem:[#allocation7] sm:$0xff] %v74_v17 }
  0x3d   :  { %89 = vst [vmem:[#allocation7 + $0x8] sm:$0xff] %v81_v19 }
  0x3e   :  { %173 = shalt.err (!%p170_p6)
}
  0x3f   :  { %s174_s10 = scalar_lea.hbm %s257_s2, 256 }
  0x40   :  { %p175_p7 = scmp.ne.s32.totalorder %s257_s2, %s174_s10  ;;  %p178_p8 = scmp.lt.u32.totalorder %s174_s10, %s257_s2 }
  0x42   :  { %p180_p9 = pnand %p178_p8, %p175_p7 }
  0x44   :  { %183 = shalt.err (!%p180_p9)
}
  0x45   :  { %101 = dma.vmem_to_hbm [thread:$0]  %s96_s6, 256, %s257_s2, [#allocation4], %s191_s19, %s191_s19, %s192_s20  }
  0x46   :  { %188 = dma.done.wait [#allocation4], 256  }
  0x47   :  { %189 = vsyncadd [#allocation4], 4294967040 }
  0x48   :  { %105 = vsyncpa [#allocation3], 1 }
  0x49   :  { %106 = vsyncpa [#allocation6], 1 }
  0x4a   :  { %107 = vsyncpa [#allocation4], 1 }

</bundles_post_ra>
